<compile_context>
chip_gen: v7x
topology: tpu7x:2x2x1
jax: 0.10.0
libtpu: 0.0.40
codegen_flags: <defaults>
</compile_context>

<pallas_src>
import functools
import math

import jax
import jax.numpy as jnp
from jax.experimental import pallas as pl
from jax.experimental.pallas import tpu as pltpu


# --------------------------------------------------------------------------
# Parameter / buffer construction (plain JAX glue, deterministic)
# --------------------------------------------------------------------------
def make_pe_table(max_len: int, d_model: int, dtype=jnp.float32):
    """Replicates the sinusoidal buffer built in __init__ (shape [max_len, d_model])."""
    position = jnp.arange(max_len, dtype=jnp.float32)[:, None]                 # [max_len, 1]
    div_term = jnp.exp(
        jnp.arange(0, d_model, 2, dtype=jnp.float32) * (-math.log(10000.0) / d_model)
    )                                                                           # [d_model//2]
    ang = position * div_term                                                   # [max_len, d_model//2]
    pe = jnp.zeros((max_len, d_model), dtype=jnp.float32)
    pe = pe.at[:, 0::2].set(jnp.sin(ang))
    pe = pe.at[:, 1::2].set(jnp.cos(ang))
    return pe.astype(dtype)


# --------------------------------------------------------------------------
# Tile / VMEM sizing helpers (generation-aware)
# --------------------------------------------------------------------------
def _vmem_capacity_bytes() -> int:
    try:
        if jax.devices()[0].platform == "tpu":
            return int(pltpu.get_tpu_info().vmem_capacity_bytes)
    except Exception:
        pass
    return 64 << 20  # conservative (v7x-sized) default


def _pick_tiles(S: int, BD: int, itemsize: int, vmem_cap: int):
    """Choose (seq_tile, lane_tile) for the lane-dense [S, B*D] view."""
    pack = max(8, 32 // itemsize)                 # sublane packing: f32 8, bf16 16, i8 32
    if BD % 128 == 0:
        tbd = min(BD, 2048)                       # lane tile: multiple of 128 -> unmasked vst
    else:
        tbd = BD                                  # full extent (can't tile without padding)

    io_budget = max(4 << 20, vmem_cap // 3)       # x-in + out, each double-buffered
    per_tile_max = max(tbd * itemsize, io_budget // 4)
    max_rows = max(1, per_tile_max // (tbd * itemsize))

    # Aim for >=4 seq steps when S allows (megacore sharding + DMA overlap).
    ts = min(max_rows, pl.cdiv(S, 4))
    ts = max(pack, (ts // pack) * pack)           # round to sublane packing
    if ts >= S:
        ts = S                                    # full-extent block is always legal
    return ts, tbd


def _vmem_limit_bytes(ts: int, tbd: int, itemsize: int, vmem_cap: int) -> int:
    tile = ts * tbd * itemsize
    pe_tile = tbd * itemsize
    need = 4 * tile + 2 * pe_tile + (2 << 20)     # io double-buffers + pe + slack
    return int(min(max(need, 16 << 20), (vmem_cap * 3) // 4))


# --------------------------------------------------------------------------
# Pallas kernels (operate on the lane-dense [TS, TBD] tiles of [S, B*D])
# --------------------------------------------------------------------------
def _pe_add_kernel(x_ref, pe_ref, o_ref, *, scale):
    # x_ref: [TS, TBD]   pe_ref: [1, TBD]  (broadcast over seq rows)
    o_ref[...] = (scale * x_ref[...] + pe_ref[...]).astype(o_ref.dtype)


def _pe_add_dropout_kernel(seed_ref, x_ref, pe_ref, o_ref, *, scale, threshold31, ts, tbd):
    # Training path: fused scale + pe-add + inverted dropout.
    # `scale` and `pe_ref` already carry the 1/(1-rate) factor (folded at trace time).
    # Mask bits come from a counter-based hash of (seed, global_row, global_col):
    # portable (interpret + Mosaic), no extra HBM traffic, decorrelated tiles/seeds.
    shape = x_ref.shape
    row0 = pl.program_id(0) * ts
    col0 = pl.program_id(1) * tbd
    r = (jax.lax.broadcasted_iota(jnp.int32, shape, 0) + row0).astype(jnp.uint32)
    c = (jax.lax.broadcasted_iota(jnp.int32, shape, 1) + col0).astype(jnp.uint32)
    h = (seed_ref[0].astype(jnp.uint32) * jnp.uint32(0xCC9E2D51)) \
        ^ (r * jnp.uint32(0x9E3779B1)) ^ (c * jnp.uint32(0x85EBCA6B))
    # lowbias32 finalizer (good avalanche).
    h = h ^ (h >> 16)
    h = h * jnp.uint32(0x7FEB352D)
    h = h ^ (h >> 15)
    h = h * jnp.uint32(0x846CA68B)
    h = h ^ (h >> 16)
    h31 = (h >> 1).astype(jnp.int32)                       # uniform in [0, 2^31)
    keep = h31 >= jnp.int32(threshold31)                   # P(keep) = 1 - rate

    y = scale * x_ref[...] + pe_ref[...]
    o_ref[...] = jnp.where(keep, y, jnp.zeros_like(y)).astype(o_ref.dtype)


# --------------------------------------------------------------------------
# Wrapper
# --------------------------------------------------------------------------
def sinusoidal_positional_encoding(
    x, pe, *, scale: bool = True, dropout: float = 0.1, training: bool = False, seed: int = 0
):
    """x: [seq_len, batch, d_model]; pe: [max_len, d_model]."""
    S, B, D = x.shape
    BD = B * D
    scale_val = math.sqrt(D) if scale else 1.0

    # Matches PyTorch `self.pe[:x.size(1)]`: slice by batch size, broadcast over seq.
    pe_slice = pe[:B].reshape(1, BD).astype(x.dtype)       # [1, B*D]

    # Lane-dense 2-D view: last dim is B*D (128-multiple -> unmasked stores).
    x2 = x.reshape(S, BD)

    itemsize = jnp.dtype(x.dtype).itemsize
    vmem_cap = _vmem_capacity_bytes()
    TS, TBD = _pick_tiles(S, BD, itemsize, vmem_cap)
    grid = (pl.cdiv(S, TS), pl.cdiv(BD, TBD))
    cparams = pltpu.CompilerParams(
        dimension_semantics=("parallel", "parallel"),
        vmem_limit_bytes=_vmem_limit_bytes(TS, TBD, itemsize, vmem_cap),
    )
    cost = pl.CostEstimate(
        flops=2 * S * BD, transcendentals=0,
        bytes_accessed=(2 * S * BD + BD) * itemsize,
    )
    out_shape = jax.ShapeDtypeStruct((S, BD), x.dtype)
    x_spec = pl.BlockSpec((TS, TBD), lambda s, c: (s, c))
    pe_spec = pl.BlockSpec((1, TBD), lambda s, c: (0, c))

    if (not training) or dropout == 0.0:
        # Inference: dropout is identity (nn.Dropout in eval mode).
        kernel = functools.partial(_pe_add_kernel, scale=scale_val)
        out2 = pl.pallas_call(
            kernel,
            out_shape=out_shape,
            grid_spec=pltpu.PrefetchScalarGridSpec(
                num_scalar_prefetch=0,
                grid=grid,
                in_specs=[x_spec, pe_spec],
                out_specs=pl.BlockSpec((TS, TBD), lambda s, c: (s, c)),
            ),
            compiler_params=cparams,
            cost_estimate=cost,
            input_output_aliases={0: 0},        # write in place over x
        )(x2, pe_slice)
        return out2.reshape(S, B, D)

    # Training: fold 1/(1-rate) into the scale constant and the pe tile once.
    rate = float(dropout)
    inv_keep = 1.0 / (1.0 - rate)
    threshold31 = min(int(round(rate * (1 << 31))), (1 << 31) - 1)
    kernel = functools.partial(
        _pe_add_dropout_kernel,
        scale=scale_val * inv_keep, threshold31=threshold31, ts=TS, tbd=TBD,
    )
    pe_adj = (pe_slice.astype(jnp.float32) * inv_keep).astype(x.dtype)
    seed_arr = jnp.array([seed], dtype=jnp.int32)

    out2 = pl.pallas_call(
        kernel,
        out_shape=out_shape,
        grid_spec=pltpu.PrefetchScalarGridSpec(
            num_scalar_prefetch=1,                           # seed -> SMEM
            grid=grid,
            in_specs=[
                pl.BlockSpec((TS, TBD), lambda s, c, seed_ref: (s, c)),
                pl.BlockSpec((1, TBD), lambda s, c, seed_ref: (0, c)),
            ],
            out_specs=pl.BlockSpec((TS, TBD), lambda s, c, seed_ref: (s, c)),
        ),
        compiler_params=cparams,
        cost_estimate=cost,
        input_output_aliases={1: 0},            # x (input idx 1, after seed) -> out 0
    )(seed_arr, x2, pe_adj)
    return out2.reshape(S, B, D)


# --------------------------------------------------------------------------
# Demo / correctness check
# --------------------------------------------------------------------------
if __name__ == "__main__":
    # B*D = 4*32 = 128 -> lane-dense output (unmasked vst path).
    SEQ, BATCH, D_MODEL, MAX_LEN = 16, 4, 32, 2048
    DROPOUT = 0.1

    key = jax.random.PRNGKey(0)
    x = jax.random.normal(key, (SEQ, BATCH, D_MODEL), dtype=jnp.float32)
    pe = make_pe_table(MAX_LEN, D_MODEL)

    # Pure-JAX reference of the PyTorch forward (eval mode).
    ref = math.sqrt(D_MODEL) * x + pe[:BATCH][None, :, :]

    # ---- eval path (dropout = identity) ----
    out = sinusoidal_positional_encoding(x, pe, scale=True, dropout=DROPOUT, training=False)
    out = jax.block_until_ready(out)
    assert out.shape == x.shape and out.dtype == x.dtype
    assert jnp.allclose(out, ref, atol=1e-5, rtol=1e-5)

    # ---- training path (fused inverted dropout) ----
    out_tr = sinusoidal_positional_encoding(
        x, pe, scale=True, dropout=DROPOUT, training=True, seed=123
    )
    out_tr = jax.block_until_ready(out_tr)
    assert out_tr.shape == x.shape and out_tr.dtype == x.dtype

    kept = out_tr != 0.0
    expected_kept = ref / (1.0 - DROPOUT)
    # Every surviving element must equal the scaled reference value.
    assert jnp.allclose(
        jnp.where(kept, out_tr, 0.0), jnp.where(kept, expected_kept, 0.0),
        atol=1e-4, rtol=1e-4,
    )
    # Keep-fraction sanity (very loose bounds around 1 - rate = 0.9).
    frac = float(jnp.mean(kept.astype(jnp.float32)))
    assert 0.75 < frac < 0.99

    print("KERNEL_OK")
</pallas_src>

<mosaic_0001>
module attributes {stable_mosaic.version = 11 : i64} {
  func.func @_pe_add_kernel(%arg0: i32, %arg1: i32, %arg2: memref<8x128xf32, #tpu.memory_space<vmem>>, %arg3: memref<1x128xf32, #tpu.memory_space<vmem>>, %arg4: memref<8x128xf32, #tpu.memory_space<vmem>>) attributes {dimension_semantics = [#tpu.dimension_semantics<parallel>, #tpu.dimension_semantics<parallel>], iteration_bounds = array<i64: 2, 1>, scalar_prefetch = 0 : i64, scratch_operands = 0 : i64, tpu.core_type = #tpu.core_type<tc>, window_params = [{transform_indices = @transform_0, window_bounds = array<i64: 8, 128>}, {transform_indices = @transform_1, window_bounds = array<i64: 1, 128>}, {transform_indices = @transform_2, window_bounds = array<i64: 8, 128>}]} {
    %c0 = arith.constant 0 : index
    %c0_0 = arith.constant 0 : index
    %0 = vector.load %arg2[%c0, %c0_0] : memref<8x128xf32, #tpu.memory_space<vmem>>, vector<8x128xf32>
    %cst = arith.constant 5.65685415 : f32
    %1 = vector.broadcast %cst : f32 to vector<8x128xf32>
    %2 = arith.mulf %1, %0 : vector<8x128xf32>
    %c0_1 = arith.constant 0 : index
    %c0_2 = arith.constant 0 : index
    %3 = vector.load %arg3[%c0_1, %c0_2] : memref<1x128xf32, #tpu.memory_space<vmem>>, vector<1x128xf32>
    %4 = vector.broadcast %3 : vector<1x128xf32> to vector<8x128xf32>
    %5 = arith.addf %2, %4 : vector<8x128xf32>
    %c0_3 = arith.constant 0 : index
    %c0_4 = arith.constant 0 : index
    %6 = vector.load %arg4[%c0_3, %c0_4] : memref<8x128xf32, #tpu.memory_space<vmem>>, vector<8x128xf32>
    tpu.vector_store %arg4[%c0_3, %c0_4], %5 {strides = array<i32>} : memref<8x128xf32, #tpu.memory_space<vmem>>, vector<8x128xf32>,
    return
  }
  func.func @transform_0(%arg0: i32, %arg1: i32) -> (i32, i32) {
    %c0_i32 = arith.constant 0 : i32
    return %arg0, %arg1 : i32, i32
  }
  func.func @transform_1(%arg0: i32, %arg1: i32) -> (i32, i32) {
    %c0_i32 = arith.constant 0 : i32
    %c0_i32_0 = arith.constant 0 : i32
    return %c0_i32, %arg1 : i32, i32
  }
  func.func @transform_2(%arg0: i32, %arg1: i32) -> (i32, i32) {
    %c0_i32 = arith.constant 0 : i32
    return %arg0, %arg1 : i32, i32
  }
}

</mosaic_0001>

<bundles_post_ra>
// kernel: tpu_custom_call.1
= control target key start
LH: loop header
LB: loop body
LE: loop exit
PB: predicated region body
PF: predicated region fallthrough
CT: control target
= control target key end

     0   :  { %7 = vsyncpa [#allocation3], 0  ;;  %s691_s0 = inlined_call_operand.hbm [shape: f32[16,128], index: 0, kind: input, shape index: {}, may-alias: {0,2}]   ;;  %s692_s1 = inlined_call_operand.vmem [shape: f32[1,128], index: 1, kind: input, shape index: {}]   ;;  %s693_s2 = inlined_call_operand.hbm [shape: f32[16,128], index: 2, kind: output, shape index: {}, may-alias: {0,2}]  }
   0x1   :  { %9 = vsyncpa [#allocation3 + $0x1], 0 }
   0x2   :  { %10 = vsyncpa [#allocation4], 0 }
   0x3   :  { %12 = vsyncpa [#allocation4 + $0x1], 0  ;;  %s516_s9 = smov 0   ;;  %s518_s10 = smov 0  }
   0x4   :  { %s520_s11 = smov 0   ;;  %s522_s12 = smov 0  }
   0x5   :  { %s524_s13 = smov 0   ;;  %s526_s14 = smov 0  }
   0x6 LB: > { %s308_s15 = sadd.s32 4294967295, %s497_s14   ;;  %s309_s16 = sadd.s32 4294967294, %s497_s14   ;;  %s497_s14 = sphi %s526_s14, %s18_s14   ;;  %s493_s13 = sphi %s524_s13, %s709_s13   ;;  %s489_s12 = sphi %s522_s12, %s708_s12   ;;  %s485_s11 = sphi %s520_s11, %s707_s11   ;;  %s481_s10 = sphi %s518_s10, %s706_s10   ;;  %s477_s9 = sphi %s516_s9, %s705_s9  }
   0x7   : > { %s30_s17 = sadd.s32 1, %s493_s13  ;;  %s39_s18 = sadd.s32 1, %s485_s11 }
   0x8   : > { %p32_p0 = scmp.ge.s32.totalorder %s30_s17, 2  ;;  %p46_p1 = scmp.ne.s32.totalorder %s485_s11, %s481_s10 }
   0x9   : > { %p47_p2 = scmp.eq.s32.totalorder %s497_s14, 0  ;;  %p52_p3 = scmp.ne.s32.totalorder %s481_s10, %s477_s9 }
   0xa   : > { %s711_s17 = smov (%p32_p0, %s30_s17), 0  ;;  %p53_p5 = scmp.eq.s32.totalorder %s308_s15, 0 }
   0xb   : > { %p557_p4 = por %p47_p2, %p46_p1  ;;  %s34_s20 = ssub.s32 %s493_s13, %s711_s17 }
   0xc   : > { %p104_p6 = scmp.eq.s32.totalorder %s308_s15, 1  ;;  %p37_p7 = scmp.eq.s32.totalorder %s34_s20, 0 }
   0xd   : > { %p563_p8 = por %p53_p5, %p52_p3  ;;  %p110_p10 = scmp.eq.s32.totalorder %s309_s16, 1 }
   0xe   : > { %p567_p9 = por %p104_p6, %p46_p1  ;;  %p335_p13 = scmp.lt.s32.totalorder %s497_s14, 2 }
   0xf   : > { %s572_s23 = scalar_select %p37_p7, %s485_s11, %s39_s18  }
  0x10   : > { %s697_s22 = scalar_select %p567_p9, 1, 0 }
  0x11   : > { %p574_p11 = por %p110_p10, %p52_p3  ;;  %s136_s25 = sand.u32 1, %s485_s11  }
  0x12   : > { %s313_s26 = sshll.u32 %s136_s25, 3  ;;  %s314_s27 = sshll.u32 %s493_s13, 7 }
  0x13   : > { %s698_s24 = scalar_select %p574_p11, 1, 0 }
  0x14   : > { %s585_s30 = scalar_lea.hbm %s691_s0, %s314_s27  ;;  %s140_s3 = scalar_lea.vmem [#allocation2], %s313_s26 }
  0x15   : > { %s148_s4 = sshll.u32 %s140_s3, 4  ;;  %p591_p0 = pnand %p335_p13, %p557_p4  ;;  %s587_s4 = int_to_ptr.vmem [resolvable:$true] %s148_s4 }
  0x16   : > { %s137_s6 = scalar_lea.sflag [#allocation3], %s136_s25  ;;  %s385_s7 = scalar_lea.hbm %s585_s30, 128 }
  0x17   : > { %p386_p3 = scmp.ne.s32.totalorder %s585_s30, %s385_s7  ;;  %p387_p5 = pneg %p591_p0 }
  0x18   : > { %s390_s16 = scalar_lea.hbm %s691_s0, 256  ;;  %p391_p4 = scmp.lt.u32.totalorder %s585_s30, %s691_s0 }
  0x19   : > { %p388_p6 = pnand %p387_p5, %p386_p3  ;;  %p392_p10 = scmp.lt.u32.totalorder %s390_s16, %s385_s7 }
  0x1a   : > { %p394_p12 = scmp.lt.u32.totalorder %s385_s7, %s585_s30 }
  0x1b   : > { %p389_p7 = pneg %p388_p6  ;;  %p393_p13 = por %p392_p10, %p391_p4 }
  0x1d   : > { %p395_p1 = por %p394_p12, %p393_p13 }
  0x1f   : > { %p396_p2 = pnand %p395_p1, %p389_p7 }
  0x21   : > { %399 = shalt.err (!%p396_p2)
}
  0x22   : > { %s400_s20 = scalar_lea.vmem %s587_s4, 128  ;;  %s499_s25 = smov [#allocation2]  }
  0x23   : > { %p401_p3 = scmp.ne.s32.totalorder %s587_s4, %s400_s20  ;;  %s405_s26 = sshll.u32 %s499_s25, 4  ;;  %s406_s26 = int_to_ptr.vmem [resolvable:$false] %s405_s26 }
  0x24   : > { %s407_s27 = scalar_lea.vmem %s406_s26, 256  ;;  %p408_p9 = scmp.lt.s32.totalorder %s587_s4, %s406_s26 }
  0x25   : > { %p403_p6 = pnand %p401_p3, %p387_p5  ;;  %p409_p4 = scmp.lt.s32.totalorder %s407_s27, %s400_s20 }
  0x27   : > { %p404_p11 = pneg %p403_p6  ;;  %p410_p10 = por %p409_p4, %p408_p9 }
  0x29   : > { %p411_p12 = pnand %p410_p10, %p404_p11 }
  0x2b   : > { %414 = shalt.err (!%p411_p12)
}
  0x2c   : > { %330 = dma.hbm_to_vmem [thread:$0]  (!%p591_p0), %s585_s30, 128, %s587_s4, %s137_s6  }
  0x2d   : > { %p700_p1 = scmp.lt.s32.totalorder %s497_s14, 3  ;;  %p701_p2 = scmp.ge.s32.totalorder %s497_s14, 1 }
  0x2f   : > { %p154_p5 = pnand %p701_p2, %p700_p1 }
  0x30   : > { %s627_s28 = sand.u32 (!%p154_p5), 1, %s481_s10  }
  0x31   : > { %157 = sbr.rel (%p154_p5) target bundleno = 83 (0x53), region = 28  ;;  %s316_s29 = sshll.u32 (!%p154_p5), %s627_s28, 3 }
  0x32   : > { %s160_s3 = scalar_lea.sflag (!%p154_p5), [#allocation3], %s627_s28  ;;  %s163_s7 = scalar_lea.vmem (!%p154_p5), [#allocation2], %s316_s29 }
  0x38   : > { %468 = dma.done.wait (%p563_p8), %s160_s3, 128  }
  0x39   : > { %470 = vsyncadd (%p563_p8), %s160_s3, 4294967168  ;;  %v190_v0 = vld [vmem:[%s163_s7] sm:$0xff]  ;;  %s186_s5 = scalar_lea.vmem [#allocation5], %s316_s29  ;;  %s320_s8 = sshll.u32 %s489_s12, 7 }
  0x3a   : > { %v318_v1 = vld [vmem:[%s692_s1] ss:$0 sm:$0xff]  ;;  %s216_s6 = sshll.u32 %s186_s5, 4  ;;  %v191_v2 = vmul.f32 5.656854, %v190_v0  ;;  %s644_s21 = scalar_lea.hbm %s693_s2, %s320_s8  ;;  %s639_s6 = int_to_ptr.vmem [resolvable:$true] %s216_s6 }
  0x3b   : > { %s202_s18 = scalar_lea.sflag [#allocation4], %s627_s28  ;;  %s415_s19 = scalar_lea.vmem %s639_s6, 128 }
  0x3c   : > { %v199_v3 = vadd.f32 %v318_v1, %v191_v2  ;;  %p416_p8 = scmp.ne.s32.totalorder %s639_s6, %s415_s19  ;;  %p702_p9 = scmp.ne.s32.totalorder %s697_s22, 0 }
  0x3d   : > { %s500_s12 = smov [#allocation5]  }
  0x3e   : > { %200 = vst [vmem:[%s186_s5] sm:$0xff] %v199_v3  ;;  %p417_p11 = pnand %p416_p8, %p702_p9  ;;  %s419_s20 = sshll.u32 %s500_s12, 4  ;;  %s420_s20 = int_to_ptr.vmem [resolvable:$false] %s419_s20 }
  0x3f   : > { %s421_s25 = scalar_lea.vmem %s420_s20, 256  ;;  %p422_p7 = scmp.lt.s32.totalorder %s639_s6, %s420_s20 }
  0x40   : > { %p418_p0 = pneg %p417_p11  ;;  %p423_p13 = scmp.lt.s32.totalorder %s421_s25, %s415_s19 }
  0x42   : > { %p424_p3 = por %p423_p13, %p422_p7 }
  0x44   : > { %p425_p6 = pnand %p424_p3, %p418_p0 }
  0x46   : > { %428 = shalt.err (!%p425_p6)
}
  0x47   : > { %s429_s26 = scalar_lea.hbm %s644_s21, 128  ;;  %s433_s29 = scalar_lea.hbm %s693_s2, 256 }
  0x48   : > { %p430_p4 = scmp.ne.s32.totalorder %s644_s21, %s429_s26  ;;  %p434_p1 = scmp.lt.u32.totalorder %s644_s21, %s693_s2 }
  0x49   : > { %p435_p2 = scmp.lt.u32.totalorder %s433_s29, %s429_s26  ;;  %p437_p8 = scmp.lt.u32.totalorder %s429_s26, %s644_s21 }
  0x4a   : > { %p431_p10 = pnand %p430_p4, %p702_p9 }
  0x4b   : > { %p436_p5 = por %p435_p2, %p434_p1 }
  0x4c   : > { %p432_p12 = pneg %p431_p10 }
  0x4d   : > { %p438_p11 = por %p437_p8, %p436_p5 }
  0x4f   : > { %p439_p0 = pnand %p438_p11, %p432_p12 }
  0x51   : > { %442 = shalt.err (!%p439_p0)
}
  0x52   : > { %325 = dma.vmem_to_hbm [thread:$0]  (%p702_p9), %s639_s6, 128, %s644_s21, %s202_s18  }
  0x53 PF: > { %s228_s30 = sand.u32 1, %s477_s9   ;;  %p703_p7 = scmp.ne.s32.totalorder %s698_s24, 0 }
  0x54   : > { %p704_p13 = scmp.ge.s32.totalorder %s497_s14, 2  ;;  %s229_s4 = scalar_lea.sflag [#allocation4], %s228_s30 }
  0x56   : > { %p332_p3 = pnand %p704_p13, %p703_p7 }
  0x58   : > { %472 = dma.done.wait (!%p332_p3), %s229_s4, 128  }
  0x59   : > { %474 = vsyncadd (!%p332_p3), %s229_s4, 4294967168  ;;  %s18_s14 = sadd.s32 1, %s497_s14   ;;  %s705_s9 = smov %s481_s10 }
  0x5a   : > { %p15_p6 = scmp.ge.s32.totalorder %s18_s14, 4   ;;  %s706_s10 = smov %s485_s11 }
  0x5b   : > { %s707_s11 = smov %s572_s23  ;;  %s708_s12 = smov %s493_s13 }
  0x5c   : > { %s709_s13 = smov %s711_s17  ;;  %17 = sbr.rel (!%p15_p6) target bundleno = 6 (0x6), region = 76 }
  0x63   :  { %234 = vsyncpa [#allocation3], 1 }
  0x64   :  { %236 = vsyncpa [#allocation3 + $0x1], 1 }
  0x65   :  { %237 = vsyncpa [#allocation4], 1 }
  0x66   :  { %239 = vsyncpa [#allocation4 + $0x1], 1 }

</bundles_post_ra>
